<compile_context>
chip_gen: v7x
topology: tpu7x:2x2x1
jax: 0.10.0
libtpu: 0.0.40
codegen_flags: <defaults>
</compile_context>

<pallas_src>
import math
import functools

import jax
import jax.numpy as jnp
from jax import lax
from jax.experimental import pallas as pl
from jax.experimental.pallas import tpu as pltpu

ENT_EPS = 1e-10
LN_EPS = 1e-5


def _vmem_limit_bytes():
    """~75% of physical VMEM (96 MiB on v5e/v6e, 48 MiB on v7x)."""
    cap = 64 * 1024 * 1024          # conservative fallback (v7x physical VMEM)
    try:
        info = pltpu.get_tpu_info()
        cap = int(getattr(info, "vmem_capacity_bytes", cap))
    except Exception:
        pass
    return max(32 * 1024 * 1024, (cap * 3) // 4)


def _layer_norm(z, g, b):
    mu = jnp.mean(z, axis=-1, keepdims=True)
    var = jnp.mean(jnp.square(z - mu), axis=-1, keepdims=True)
    return (z - mu) * lax.rsqrt(var + LN_EPS) * g + b


def _const_index_map(ndim):
    return lambda b, _n=ndim: (0,) * _n


# ---------------------------------------------------------------------------
# Shared-memory K/V projection: computed ONCE (not per batch element).
# ---------------------------------------------------------------------------
def _mem_kv_kernel(mem_ref, wkv_ref, bkv_ref, out_ref):
    m = mem_ref[...].astype(jnp.bfloat16)
    out_ref[...] = (jnp.dot(m, wkv_ref[...], preferred_element_type=jnp.float32)
                    + bkv_ref[...])


def mem_kv_proj(mem_x, w_kv, b_kv):
    M, E = mem_x.shape
    return pl.pallas_call(
        _mem_kv_kernel,
        out_shape=jax.ShapeDtypeStruct((M, 2 * E), jnp.float32),
        compiler_params=pltpu.CompilerParams(
            vmem_limit_bytes=_vmem_limit_bytes()),
    )(mem_x, w_kv, b_kv)


# ---------------------------------------------------------------------------
# Layer kernel: attention + entropy + LayerNorms + FFN, grid over batch.
# ---------------------------------------------------------------------------
def _layer_kernel(num_heads, has_mem, *refs):
    if has_mem:
        x_ref, memkv_ref = refs[0], refs[1]
        rest = refs[2:]
    else:
        x_ref, memkv_ref = refs[0], None
        rest = refs[1:]
    (wqkv_ref, bqkv_ref, wo_ref, bo_ref, g1_ref, be1_ref,
     w1_ref, bf1_ref, w2_ref, bf2_ref, g2_ref, be2_ref,
     out_ref, ent_ref) = rest

    f32, bf16 = jnp.float32, jnp.bfloat16

    x = x_ref[0]                                        # (T, E) f32
    T, E = x.shape
    H = num_heads
    hd = E // H
    scale = 1.0 / math.sqrt(hd)
    is_b0 = pl.program_id(0) == 0

    # Fused QKV projection: one full-width (T,E)x(E,3E) MXU matmul.
    x_b = x.astype(bf16)
    qkv = (jnp.dot(x_b, wqkv_ref[...], preferred_element_type=f32)
           + bqkv_ref[...])                             # (T, 3E)
    q = qkv[:, :E] * scale
    k_x = qkv[:, E:2 * E]
    v_x = qkv[:, 2 * E:]

    if has_mem:
        mem_kv = memkv_ref[...]                         # (M, 2E), projected once
        k = jnp.concatenate([mem_kv[:, :E], k_x], axis=0)    # (S, E)
        v = jnp.concatenate([mem_kv[:, E:], v_x], axis=0)    # (S, E)
    else:
        k, v = k_x, v_x

    q_b = q.astype(bf16)
    k_b = k.astype(bf16)
    v_b = v.astype(bf16)

    # Per-head attention: 2-D MXU matmuls on lane slices of the fused
    # projections (score contraction = hd, PV contraction = S).
    ctx_heads = []
    for h in range(H):
        sl = slice(h * hd, (h + 1) * hd)
        s = jnp.einsum("tc,sc->ts", q_b[:, sl], k_b[:, sl],
                       preferred_element_type=f32)                # (T, S)
        m = jnp.max(s, axis=-1, keepdims=True)
        ss = s - m
        p = jnp.exp(ss)
        z = jnp.sum(p, axis=-1, keepdims=True)                    # (T, 1)
        w = p / z        # exact reciprocal: entropy drives the memory top-k

        # Attention entropy via logsumexp identity (reuses z); only batch 0's
        # entropy is consumed downstream, so skip the work for b > 0.
        @pl.when(is_b0)
        def _():
            ent_h = jnp.log(z) - jnp.sum(w * ss, axis=-1, keepdims=True)
            if h == 0:
                ent_ref[0] = ent_h                                # (T, 1)
            else:
                ent_ref[0] = jnp.maximum(ent_ref[0], ent_h)       # max over heads

        ctx_heads.append(jnp.dot(w.astype(bf16), v_b[:, sl],
                                 preferred_element_type=f32))     # (T, hd)

    # Head concat on the lane axis + single full-E output projection.
    ctx = jnp.concatenate(ctx_heads, axis=1).astype(bf16)         # (T, E)
    attn = jnp.dot(ctx, wo_ref[...], preferred_element_type=f32) + bo_ref[...]

    x2 = _layer_norm(x + attn, g1_ref[...], be1_ref[...])
    h1 = jnp.maximum(
        jnp.dot(x2.astype(bf16), w1_ref[...], preferred_element_type=f32)
        + bf1_ref[...], 0.0)
    ff = (jnp.dot(h1.astype(bf16), w2_ref[...], preferred_element_type=f32)
          + bf2_ref[...])
    out = _layer_norm(x2 + ff, g2_ref[...], be2_ref[...])

    out_ref[0] = out.astype(out_ref.dtype)                        # bf16


def layer_forward(emb, mem_kv, kp, num_heads):
    """Memory-transformer layer in one Pallas call, grid over batch."""
    B, T, E = emb.shape
    has_mem = mem_kv is not None

    args = [emb]
    in_specs = [pl.BlockSpec((1, T, E), lambda b: (b, 0, 0))]
    if has_mem:
        M = mem_kv.shape[0]
        args.append(mem_kv)
        # constant block index -> shared-memory K/V fetched once, not per batch
        in_specs.append(pl.BlockSpec((M, 2 * E), lambda b: (0, 0)))

    weight_names = ["w_qkv", "b_qkv", "wo", "bo", "g1", "be1",
                    "w1", "bf1", "w2", "bf2", "g2", "be2"]
    weights = [kp[n] for n in weight_names]
    in_specs += [pl.BlockSpec(w.shape, _const_index_map(w.ndim)) for w in weights]
    args += weights

    out_specs = [pl.BlockSpec((1, T, E), lambda b: (b, 0, 0)),
                 pl.BlockSpec((1, T, 1), lambda b: (b, 0, 0))]
    out_shape = (jax.ShapeDtypeStruct((B, T, E), jnp.bfloat16),   # bf16 for head
                 jax.ShapeDtypeStruct((B, T, 1), jnp.float32))

    kernel = functools.partial(_layer_kernel, num_heads, has_mem)
    out, ent = pl.pallas_call(
        kernel,
        out_shape=out_shape,
        grid_spec=pltpu.PrefetchScalarGridSpec(
            num_scalar_prefetch=0,
            grid=(B,),
            in_specs=in_specs,
            out_specs=out_specs),
        compiler_params=pltpu.CompilerParams(
            dimension_semantics=("parallel",),
            vmem_limit_bytes=_vmem_limit_bytes()),
    )(*args)
    return out, ent


# ---------------------------------------------------------------------------
# Vocab output head: flattened (B*T, E) activations, grid over vocab tiles.
# Each (E, tv) weight tile is streamed from HBM exactly once.
# ---------------------------------------------------------------------------
def _vocab_head_kernel(x_ref, w_ref, b_ref, logits_ref):
    logits_ref[...] = (jnp.dot(x_ref[...], w_ref[...],
                               preferred_element_type=jnp.float32)
                       + b_ref[...])


def _vocab_tile(V):
    for tv in (4096, 2048, 1024, 512, 256, 128):
        if V % tv == 0 and V // tv > 1:
            return tv
    return V


def vocab_head(x2d, wout, bout):
    BT, E = x2d.shape
    V = wout.shape[1]
    tv = _vocab_tile(V)
    nv = V // tv
    # TODO(synk): additionally tile the B*T axis for very long chunks.
    return pl.pallas_call(
        _vocab_head_kernel,
        out_shape=jax.ShapeDtypeStruct((BT, V), jnp.float32),
        grid_spec=pltpu.PrefetchScalarGridSpec(
            num_scalar_prefetch=0,
            grid=(nv,),
            in_specs=[pl.BlockSpec((BT, E), lambda v: (0, 0)),    # resident
                      pl.BlockSpec((E, tv), lambda v: (0, v)),
                      pl.BlockSpec((1, tv), lambda v: (0, v))],
            out_specs=pl.BlockSpec((BT, tv), lambda v: (0, v))),
        compiler_params=pltpu.CompilerParams(
            dimension_semantics=("parallel",),
            vmem_limit_bytes=_vmem_limit_bytes()),
    )(x2d, wout, bout)


# ---------------------------------------------------------------------------
# Full model forward (glue: embedding gather, memory concat, top-k compress).
# ---------------------------------------------------------------------------
def model_forward(params, kparams, tokens, mem_x, mem_ent, mem_size, num_heads):
    emb = jnp.take(params["embed"], tokens, axis=0)        # (B, T, E) gather (glue)
    B, T, E = emb.shape

    mem_kv = None
    if mem_x is not None:
        mem_kv = mem_kv_proj(mem_x, kparams["w_kv"], kparams["b_kv"])   # once

    out_bf16, ent = layer_forward(emb, mem_kv, kparams, num_heads)
    logits = vocab_head(out_bf16.reshape(B * T, E),
                        kparams["wout"], kparams["bout"]).reshape(B, T, -1)

    ent_tok = ent[0, :, 0]                                 # (T,) batch 0, max over heads
    mem_update = lax.stop_gradient(emb[0])                 # detach_mem=True

    if mem_x is None:
        mem_x_new, mem_ent_new = mem_update, ent_tok
    else:
        mem_x_new = jnp.concatenate([mem_x, mem_update], axis=0)
        mem_ent_new = jnp.concatenate([mem_ent, ent_tok], axis=0)

    if mem_x_new.shape[0] > mem_size:                      # static-shape branch
        vals, idx = lax.top_k(mem_ent_new, mem_size)       # data-dependent select (glue)
        total = jnp.sum(mem_ent_new) + ENT_EPS
        kept = jnp.sum(vals)
        mem_x_new = mem_x_new[idx]
        mem_ent_new = vals
        ratio = kept / total                               # jnp scalar (no host sync)
    else:
        ratio = 1.0
    return logits, mem_x_new, mem_ent_new, ratio


# ---------------------------------------------------------------------------
# Parameters.
# ---------------------------------------------------------------------------
def init_params(key, vocab, E):
    ks = jax.random.split(key, 16)
    f32 = jnp.float32

    def mat(k, din, dout, scale=0.1):
        return jax.random.normal(k, (din, dout), f32) * scale

    def vec(k, d, scale=0.02):
        return jax.random.normal(k, (1, d), f32) * scale

    return {
        "embed": jax.random.normal(ks[0], (vocab, E), f32) * 0.1,
        # attention in/out projections (stored pre-transposed: [in, out])
        "wq_t": mat(ks[1], E, E), "wk_t": mat(ks[2], E, E), "wv_t": mat(ks[3], E, E),
        "bq": vec(ks[4], E), "bk": vec(ks[5], E), "bv": vec(ks[6], E),
        "wo_t": mat(ks[7], E, E), "bo": vec(ks[8], E),
        # layer norms
        "g1": jnp.ones((1, E), f32), "be1": jnp.zeros((1, E), f32),
        "g2": jnp.ones((1, E), f32), "be2": jnp.zeros((1, E), f32),
        # feed-forward
        "w1_t": mat(ks[9], E, 4 * E), "bf1": vec(ks[10], 4 * E),
        "w2_t": mat(ks[11], 4 * E, E), "bf2": vec(ks[12], E),
        # output head
        "wout_t": mat(ks[13], E, vocab), "bout": vec(ks[14], vocab),
    }


def prepare_kernel_params(p, num_heads):
    """Host-side (static) fusions/casts of the weights for the kernels."""
    del num_heads  # head split is a lane slice inside the kernel (columns h*hd:(h+1)*hd)
    bf16 = jnp.bfloat16
    return {
        # fused QKV for the chunk and fused KV for the shared memory
        "w_qkv": jnp.concatenate([p["wq_t"], p["wk_t"], p["wv_t"]], axis=1).astype(bf16),
        "b_qkv": jnp.concatenate([p["bq"], p["bk"], p["bv"]], axis=1),
        "w_kv": jnp.concatenate([p["wk_t"], p["wv_t"]], axis=1).astype(bf16),
        "b_kv": jnp.concatenate([p["bk"], p["bv"]], axis=1),
        "wo": p["wo_t"].astype(bf16), "bo": p["bo"],
        "g1": p["g1"], "be1": p["be1"],
        "w1": p["w1_t"].astype(bf16), "bf1": p["bf1"],
        "w2": p["w2_t"].astype(bf16), "bf2": p["bf2"],
        "g2": p["g2"], "be2": p["be2"],
        "wout": p["wout_t"].astype(bf16), "bout": p["bout"],
    }


if __name__ == "__main__":
    B, T = 2, 8
    E, H, V = 32, 2, 256
    MEM_SIZE = 12   # small memory so the top-k compression path is exercised

    key = jax.random.PRNGKey(0)
    pkey, dkey1, dkey2 = jax.random.split(key, 3)
    params = init_params(pkey, V, E)
    kparams = prepare_kernel_params(params, H)

    tokens1 = jax.random.randint(dkey1, (B, T), 0, V)
    tokens2 = jax.random.randint(dkey2, (B, T), 0, V)

    # chunk 1: no memory yet (k = v = x)
    logits1, mem_x, mem_ent, ratio1 = model_forward(
        params, kparams, tokens1, None, None, MEM_SIZE, H)
    # chunk 2: shared memory K/V projected once, then compressed via top-k
    logits2, mem_x, mem_ent, ratio2 = model_forward(
        params, kparams, tokens2, mem_x, mem_ent, MEM_SIZE, H)

    jax.block_until_ready((logits1, logits2, mem_x, mem_ent))

    assert logits1.shape == (B, T, V) and logits2.shape == (B, T, V)
    assert mem_x.shape == (MEM_SIZE, E) and mem_ent.shape == (MEM_SIZE,)
    assert 0.0 < float(ratio2) <= 1.0 and ratio1 == 1.0
    print("KERNEL_OK")
</pallas_src>

<mosaic_0001>
module attributes {stable_mosaic.version = 11 : i64} {
  func.func @_layer_kernel(%arg0: i32, %arg1: memref<1x8x32xf32, #tpu.memory_space<vmem>>, %arg2: memref<32x96xbf16, #tpu.memory_space<vmem>>, %arg3: memref<1x96xf32, #tpu.memory_space<vmem>>, %arg4: memref<32x32xbf16, #tpu.memory_space<vmem>>, %arg5: memref<1x32xf32, #tpu.memory_space<vmem>>, %arg6: memref<1x32xf32, #tpu.memory_space<vmem>>, %arg7: memref<1x32xf32, #tpu.memory_space<vmem>>, %arg8: memref<32x128xbf16, #tpu.memory_space<vmem>>, %arg9: memref<1x128xf32, #tpu.memory_space<vmem>>, %arg10: memref<128x32xbf16, #tpu.memory_space<vmem>>, %arg11: memref<1x32xf32, #tpu.memory_space<vmem>>, %arg12: memref<1x32xf32, #tpu.memory_space<vmem>>, %arg13: memref<1x32xf32, #tpu.memory_space<vmem>>, %arg14: memref<1x8x32xbf16, #tpu.memory_space<vmem>>, %arg15: memref<1x8x1xf32, #tpu.memory_space<vmem>>) attributes {dimension_semantics = [#tpu.dimension_semantics<parallel>], iteration_bounds = array<i64: 2>, scalar_prefetch = 0 : i64, scratch_operands = 0 : i64, tpu.core_type = #tpu.core_type<tc>, window_params = [{transform_indices = @transform_0, window_bounds = array<i64: 1, 8, 32>}, {pipeline_mode = #tpu.pipeline_mode<synchronous>, transform_indices = @transform_1, window_bounds = array<i64: 32, 96>}, {pipeline_mode = #tpu.pipeline_mode<synchronous>, transform_indices = @transform_2, window_bounds = array<i64: 1, 96>}, {pipeline_mode = #tpu.pipeline_mode<synchronous>, transform_indices = @transform_3, window_bounds = array<i64: 32, 32>}, {pipeline_mode = #tpu.pipeline_mode<synchronous>, transform_indices = @transform_4, window_bounds = array<i64: 1, 32>}, {pipeline_mode = #tpu.pipeline_mode<synchronous>, transform_indices = @transform_5, window_bounds = array<i64: 1, 32>}, {pipeline_mode = #tpu.pipeline_mode<synchronous>, transform_indices = @transform_6, window_bounds = array<i64: 1, 32>}, {pipeline_mode = #tpu.pipeline_mode<synchronous>, transform_indices = @transform_7, window_bounds = array<i64: 32, 128>}, {pipeline_mode = #tpu.pipeline_mode<synchronous>, transform_indices = @transform_8, window_bounds = array<i64: 1, 128>}, {pipeline_mode = #tpu.pipeline_mode<synchronous>, transform_indices = @transform_9, window_bounds = array<i64: 128, 32>}, {pipeline_mode = #tpu.pipeline_mode<synchronous>, transform_indices = @transform_10, window_bounds = array<i64: 1, 32>}, {pipeline_mode = #tpu.pipeline_mode<synchronous>, transform_indices = @transform_11, window_bounds = array<i64: 1, 32>}, {pipeline_mode = #tpu.pipeline_mode<synchronous>, transform_indices = @transform_12, window_bounds = array<i64: 1, 32>}, {transform_indices = @transform_13, window_bounds = array<i64: 1, 8, 32>}, {transform_indices = @transform_14, window_bounds = array<i64: 1, 8, 1>}]} {
    %c0 = arith.constant 0 : index
    %c0_0 = arith.constant 0 : index
    %c0_1 = arith.constant 0 : index
    %0 = vector.load %arg1[%c0, %c0_0, %c0_1] : memref<1x8x32xf32, #tpu.memory_space<vmem>>, vector<1x8x32xf32>
    %1 = vector.shape_cast %0 : vector<1x8x32xf32> to vector<8x32xf32>
    %c0_i32 = arith.constant 0 : i32
    %2 = arith.cmpi eq, %arg0, %c0_i32 : i32
    %3 = arith.truncf %1 : vector<8x32xf32> to vector<8x32xbf16>
    %c0_2 = arith.constant 0 : index
    %c0_3 = arith.constant 0 : index
    %4 = vector.load %arg2[%c0_2, %c0_3] : memref<32x96xbf16, #tpu.memory_space<vmem>>, vector<32x96xbf16>
    %cst = arith.constant dense<0.000000e+00> : vector<8x96xf32>
    %5 = tpu.matmul %3, %4, %cst {dimension_numbers = #tpu.dot_dimension_numbers<[1], [0], [0], [1], [0, 0, 1, 1], [], []>} : vector<8x32xbf16>, vector<32x96xbf16>, vector<8x96xf32> -> vector<8x96xf32>
    %c0_4 = arith.constant 0 : index
    %c0_5 = arith.constant 0 : index
    %6 = vector.load %arg3[%c0_4, %c0_5] : memref<1x96xf32, #tpu.memory_space<vmem>>, vector<1x96xf32>
    %7 = vector.broadcast %6 : vector<1x96xf32> to vector<8x96xf32>
    %8 = arith.addf %5, %7 : vector<8x96xf32>
    %9 = vector.extract_strided_slice %8 {offsets = [0, 0], sizes = [8, 32], strides = [1, 1]} : vector<8x96xf32> to vector<8x32xf32>
    %cst_6 = arith.constant 2.500000e-01 : f32
    %10 = vector.broadcast %cst_6 : f32 to vector<8x32xf32>
    %11 = arith.mulf %9, %10 : vector<8x32xf32>
    %12 = vector.extract_strided_slice %8 {offsets = [0, 32], sizes = [8, 32], strides = [1, 1]} : vector<8x96xf32> to vector<8x32xf32>
    %13 = vector.extract_strided_slice %8 {offsets = [0, 64], sizes = [8, 32], strides = [1, 1]} : vector<8x96xf32> to vector<8x32xf32>
    %14 = arith.truncf %11 : vector<8x32xf32> to vector<8x32xbf16>
    %15 = arith.truncf %12 : vector<8x32xf32> to vector<8x32xbf16>
    %16 = arith.truncf %13 : vector<8x32xf32> to vector<8x32xbf16>
    %17 = vector.extract_strided_slice %14 {offsets = [0, 0], sizes = [8, 16], strides = [1, 1]} : vector<8x32xbf16> to vector<8x16xbf16>
    %18 = vector.extract_strided_slice %15 {offsets = [0, 0], sizes = [8, 16], strides = [1, 1]} : vector<8x32xbf16> to vector<8x16xbf16>
    "tpu.trace_start"() <{level = 10 : i32, message = "tc,sc->ts"}> : () -> ()
    %cst_7 = arith.constant dense<0.000000e+00> : vector<8x8xf32>
    %19 = tpu.matmul %17, %18, %cst_7 {dimension_numbers = #tpu.dot_dimension_numbers<[1], [1], [0], [0], [0, 0, 1, 0], [], []>} : vector<8x16xbf16>, vector<8x16xbf16>, vector<8x8xf32> -> vector<8x8xf32>
    "tpu.trace_stop"() : () -> ()
    %cst_8 = arith.constant dense<0xFF800000> : vector<8xf32>
    %20 = vector.multi_reduction <maximumf>, %19, %cst_8 [1] : vector<8x8xf32> to vector<8xf32>
    %21 = vector.shape_cast %20 : vector<8xf32> to vector<8x1xf32>
    %22 = vector.broadcast %21 : vector<8x1xf32> to vector<8x8xf32>
    %23 = arith.subf %19, %22 : vector<8x8xf32>
    %24 = math.exp %23 : vector<8x8xf32>
    %cst_9 = arith.constant dense<0.000000e+00> : vector<8xf32>
    %25 = vector.multi_reduction <add>, %24, %cst_9 [1] : vector<8x8xf32> to vector<8xf32>
    %26 = vector.shape_cast %25 : vector<8xf32> to vector<8x1xf32>
    %27 = vector.broadcast %26 : vector<8x1xf32> to vector<8x8xf32>
    %28 = arith.divf %24, %27 : vector<8x8xf32>
    %29 = arith.extui %2 : i1 to i32
    %c0_i32_10 = arith.constant 0 : i32
    %30 = arith.cmpi ne, %29, %c0_i32_10 : i32
    scf.if %30 {
      %126 = math.log %26 : vector<8x1xf32>
      %127 = arith.mulf %28, %23 : vector<8x8xf32>
      %cst_54 = arith.constant dense<0.000000e+00> : vector<8xf32>
      %128 = vector.multi_reduction <add>, %127, %cst_54 [1] : vector<8x8xf32> to vector<8xf32>
      %129 = vector.shape_cast %128 : vector<8xf32> to vector<8x1xf32>
      %130 = arith.subf %126, %129 : vector<8x1xf32>
      %c0_55 = arith.constant 0 : index
      %c0_56 = arith.constant 0 : index
      %c0_57 = arith.constant 0 : index
      %131 = vector.load %arg15[%c0_55, %c0_56, %c0_57] : memref<1x8x1xf32, #tpu.memory_space<vmem>>, vector<1x8x1xf32>
      %132 = vector.shape_cast %131 : vector<1x8x1xf32> to vector<8x1xf32>
      %133 = vector.shape_cast %130 : vector<8x1xf32> to vector<1x8x1xf32>
      tpu.vector_store %arg15[%c0_55, %c0_56, %c0_57], %133 {strides = array<i32>} : memref<1x8x1xf32, #tpu.memory_space<vmem>>, vector<1x8x1xf32>,
    } else {
    }
    %31 = arith.truncf %28 : vector<8x8xf32> to vector<8x8xbf16>
    %32 = vector.extract_strided_slice %16 {offsets = [0, 0], sizes = [8, 16], strides = [1, 1]} : vector<8x32xbf16> to vector<8x16xbf16>
    %cst_11 = arith.constant dense<0.000000e+00> : vector<8x16xf32>
    %33 = tpu.matmul %31, %32, %cst_11 {dimension_numbers = #tpu.dot_dimension_numbers<[1], [0], [0], [1], [0, 0, 1, 1], [], []>} : vector<8x8xbf16>, vector<8x16xbf16>, vector<8x16xf32> -> vector<8x16xf32>
    %34 = vector.extract_strided_slice %14 {offsets = [0, 16], sizes = [8, 16], strides = [1, 1]} : vector<8x32xbf16> to vector<8x16xbf16>
    %35 = vector.extract_strided_slice %15 {offsets = [0, 16], sizes = [8, 16], strides = [1, 1]} : vector<8x32xbf16> to vector<8x16xbf16>
    "tpu.trace_start"() <{level = 10 : i32, message = "tc,sc->ts"}> : () -> ()
    %cst_12 = arith.constant dense<0.000000e+00> : vector<8x8xf32>
    %36 = tpu.matmul %34, %35, %cst_12 {dimension_numbers = #tpu.dot_dimension_numbers<[1], [1], [0], [0], [0, 0, 1, 0], [], []>} : vector<8x16xbf16>, vector<8x16xbf16>, vector<8x8xf32> -> vector<8x8xf32>
    "tpu.trace_stop"() : () -> ()
    %cst_13 = arith.constant dense<0xFF800000> : vector<8xf32>
    %37 = vector.multi_reduction <maximumf>, %36, %cst_13 [1] : vector<8x8xf32> to vector<8xf32>
    %38 = vector.shape_cast %37 : vector<8xf32> to vector<8x1xf32>
    %39 = vector.broadcast %38 : vector<8x1xf32> to vector<8x8xf32>
    %40 = arith.subf %36, %39 : vector<8x8xf32>
    %41 = math.exp %40 : vector<8x8xf32>
    %cst_14 = arith.constant dense<0.000000e+00> : vector<8xf32>
    %42 = vector.multi_reduction <add>, %41, %cst_14 [1] : vector<8x8xf32> to vector<8xf32>
    %43 = vector.shape_cast %42 : vector<8xf32> to vector<8x1xf32>
    %44 = vector.broadcast %43 : vector<8x1xf32> to vector<8x8xf32>
    %45 = arith.divf %41, %44 : vector<8x8xf32>
    %46 = arith.extui %2 : i1 to i32
    %c0_i32_15 = arith.constant 0 : i32
    %47 = arith.cmpi ne, %46, %c0_i32_15 : i32
    scf.if %47 {
      %126 = math.log %43 : vector<8x1xf32>
      %127 = arith.mulf %45, %40 : vector<8x8xf32>
      %cst_54 = arith.constant dense<0.000000e+00> : vector<8xf32>
      %128 = vector.multi_reduction <add>, %127, %cst_54 [1] : vector<8x8xf32> to vector<8xf32>
      %129 = vector.shape_cast %128 : vector<8xf32> to vector<8x1xf32>
      %130 = arith.subf %126, %129 : vector<8x1xf32>
      %c0_55 = arith.constant 0 : index
      %c0_56 = arith.constant 0 : index
      %c0_57 = arith.constant 0 : index
      %131 = vector.load %arg15[%c0_55, %c0_56, %c0_57] : memref<1x8x1xf32, #tpu.memory_space<vmem>>, vector<1x8x1xf32>
      %132 = vector.shape_cast %131 : vector<1x8x1xf32> to vector<8x1xf32>
      %133 = arith.maximumf %132, %130 : vector<8x1xf32>
      %c0_58 = arith.constant 0 : index
      %c0_59 = arith.constant 0 : index
      %c0_60 = arith.constant 0 : index
      %134 = vector.load %arg15[%c0_58, %c0_59, %c0_60] : memref<1x8x1xf32, #tpu.memory_space<vmem>>, vector<1x8x1xf32>
      %135 = vector.shape_cast %134 : vector<1x8x1xf32> to vector<8x1xf32>
      %136 = vector.shape_cast %133 : vector<8x1xf32> to vector<1x8x1xf32>
      tpu.vector_store %arg15[%c0_58, %c0_59, %c0_60], %136 {strides = array<i32>} : memref<1x8x1xf32, #tpu.memory_space<vmem>>, vector<1x8x1xf32>,
    } else {
    }
    %48 = arith.truncf %45 : vector<8x8xf32> to vector<8x8xbf16>
    %49 = vector.extract_strided_slice %16 {offsets = [0, 16], sizes = [8, 16], strides = [1, 1]} : vector<8x32xbf16> to vector<8x16xbf16>
    %cst_16 = arith.constant dense<0.000000e+00> : vector<8x16xf32>
    %50 = tpu.matmul %48, %49, %cst_16 {dimension_numbers = #tpu.dot_dimension_numbers<[1], [0], [0], [1], [0, 0, 1, 1], [], []>} : vector<8x8xbf16>, vector<8x16xbf16>, vector<8x16xf32> -> vector<8x16xf32>
    %51 = tpu.concatenate %33, %50 in 1 : vector<8x16xf32>, vector<8x16xf32> -> vector<8x32xf32>
    %52 = arith.truncf %51 : vector<8x32xf32> to vector<8x32xbf16>
    %c0_17 = arith.constant 0 : index
    %c0_18 = arith.constant 0 : index
    %53 = vector.load %arg4[%c0_17, %c0_18] : memref<32x32xbf16, #tpu.memory_space<vmem>>, vector<32x32xbf16>
    %cst_19 = arith.constant dense<0.000000e+00> : vector<8x32xf32>
    %54 = tpu.matmul %52, %53, %cst_19 {dimension_numbers = #tpu.dot_dimension_numbers<[1], [0], [0], [1], [0, 0, 1, 1], [], []>} : vector<8x32xbf16>, vector<32x32xbf16>, vector<8x32xf32> -> vector<8x32xf32>
    %c0_20 = arith.constant 0 : index
    %c0_21 = arith.constant 0 : index
    %55 = vector.load %arg5[%c0_20, %c0_21] : memref<1x32xf32, #tpu.memory_space<vmem>>, vector<1x32xf32>
    %56 = vector.broadcast %55 : vector<1x32xf32> to vector<8x32xf32>
    %57 = arith.addf %54, %56 : vector<8x32xf32>
    %58 = arith.addf %1, %57 : vector<8x32xf32>
    %c0_22 = arith.constant 0 : index
    %c0_23 = arith.constant 0 : index
    %59 = vector.load %arg6[%c0_22, %c0_23] : memref<1x32xf32, #tpu.memory_space<vmem>>, vector<1x32xf32>
    %c0_24 = arith.constant 0 : index
    %c0_25 = arith.constant 0 : index
    %60 = vector.load %arg7[%c0_24, %c0_25] : memref<1x32xf32, #tpu.memory_space<vmem>>, vector<1x32xf32>
    %cst_26 = arith.constant dense<0.000000e+00> : vector<8xf32>
    %61 = vector.multi_reduction <add>, %58, %cst_26 [1] : vector<8x32xf32> to vector<8xf32>
    %62 = vector.shape_cast %61 : vector<8xf32> to vector<8x1xf32>
    %cst_27 = arith.constant 3.200000e+01 : f32
    %63 = vector.broadcast %cst_27 : f32 to vector<8x1xf32>
    %64 = arith.divf %62, %63 : vector<8x1xf32>
    %65 = vector.broadcast %64 : vector<8x1xf32> to vector<8x32xf32>
    %66 = arith.subf %58, %65 : vector<8x32xf32>
    %67 = arith.mulf %66, %66 : vector<8x32xf32>
    %cst_28 = arith.constant dense<0.000000e+00> : vector<8xf32>
    %68 = vector.multi_reduction <add>, %67, %cst_28 [1] : vector<8x32xf32> to vector<8xf32>
    %69 = vector.shape_cast %68 : vector<8xf32> to vector<8x1xf32>
    %cst_29 = arith.constant 3.200000e+01 : f32
    %70 = vector.broadcast %cst_29 : f32 to vector<8x1xf32>
    %71 = arith.divf %69, %70 : vector<8x1xf32>
    %72 = vector.broadcast %64 : vector<8x1xf32> to vector<8x32xf32>
    %73 = arith.subf %58, %72 : vector<8x32xf32>
    %cst_30 = arith.constant 9.99999974E-6 : f32
    %74 = vector.broadcast %cst_30 : f32 to vector<8x1xf32>
    %75 = arith.addf %71, %74 : vector<8x1xf32>
    %76 = math.rsqrt %75 : vector<8x1xf32>
    %77 = vector.broadcast %76 : vector<8x1xf32> to vector<8x32xf32>
    %78 = arith.mulf %73, %77 : vector<8x32xf32>
    %79 = vector.broadcast %59 : vector<1x32xf32> to vector<8x32xf32>
    %80 = arith.mulf %78, %79 : vector<8x32xf32>
    %81 = vector.broadcast %60 : vector<1x32xf32> to vector<8x32xf32>
    %82 = arith.addf %80, %81 : vector<8x32xf32>
    %83 = arith.truncf %82 : vector<8x32xf32> to vector<8x32xbf16>
    %c0_31 = arith.constant 0 : index
    %c0_32 = arith.constant 0 : index
    %84 = vector.load %arg8[%c0_31, %c0_32] : memref<32x128xbf16, #tpu.memory_space<vmem>>, vector<32x128xbf16>
    %cst_33 = arith.constant dense<0.000000e+00> : vector<8x128xf32>
    %85 = tpu.matmul %83, %84, %cst_33 {dimension_numbers = #tpu.dot_dimension_numbers<[1], [0], [0], [1], [0, 0, 1, 1], [], []>} : vector<8x32xbf16>, vector<32x128xbf16>, vector<8x128xf32> -> vector<8x128xf32>
    %c0_34 = arith.constant 0 : index
    %c0_35 = arith.constant 0 : index
    %86 = vector.load %arg9[%c0_34, %c0_35] : memref<1x128xf32, #tpu.memory_space<vmem>>, vector<1x128xf32>
    %87 = vector.broadcast %86 : vector<1x128xf32> to vector<8x128xf32>
    %88 = arith.addf %85, %87 : vector<8x128xf32>
    %cst_36 = arith.constant 0.000000e+00 : f32
    %89 = vector.broadcast %cst_36 : f32 to vector<8x128xf32>
    %90 = arith.maximumf %88, %89 : vector<8x128xf32>
    %91 = arith.truncf %90 : vector<8x128xf32> to vector<8x128xbf16>
    %c0_37 = arith.constant 0 : index
    %c0_38 = arith.constant 0 : index
    %92 = vector.load %arg10[%c0_37, %c0_38] : memref<128x32xbf16, #tpu.memory_space<vmem>>, vector<128x32xbf16>
    %cst_39 = arith.constant dense<0.000000e+00> : vector<8x32xf32>
    %93 = tpu.matmul %91, %92, %cst_39 {dimension_numbers = #tpu.dot_dimension_numbers<[1], [0], [0], [1], [0, 0, 1, 1], [], []>} : vector<8x128xbf16>, vector<128x32xbf16>, vector<8x32xf32> -> vector<8x32xf32>
    %c0_40 = arith.constant 0 : index
    %c0_41 = arith.constant 0 : index
    %94 = vector.load %arg11[%c0_40, %c0_41] : memref<1x32xf32, #tpu.memory_space<vmem>>, vector<1x32xf32>
    %95 = vector.broadcast %94 : vector<1x32xf32> to vector<8x32xf32>
    %96 = arith.addf %93, %95 : vector<8x32xf32>
    %97 = arith.addf %82, %96 : vector<8x32xf32>
    %c0_42 = arith.constant 0 : index
    %c0_43 = arith.constant 0 : index
    %98 = vector.load %arg12[%c0_42, %c0_43] : memref<1x32xf32, #tpu.memory_space<vmem>>, vector<1x32xf32>
    %c0_44 = arith.constant 0 : index
    %c0_45 = arith.constant 0 : index
    %99 = vector.load %arg13[%c0_44, %c0_45] : memref<1x32xf32, #tpu.memory_space<vmem>>, vector<1x32xf32>
    %cst_46 = arith.constant dense<0.000000e+00> : vector<8xf32>
    %100 = vector.multi_reduction <add>, %97, %cst_46 [1] : vector<8x32xf32> to vector<8xf32>
    %101 = vector.shape_cast %100 : vector<8xf32> to vector<8x1xf32>
    %cst_47 = arith.constant 3.200000e+01 : f32
    %102 = vector.broadcast %cst_47 : f32 to vector<8x1xf32>
    %103 = arith.divf %101, %102 : vector<8x1xf32>
    %104 = vector.broadcast %103 : vector<8x1xf32> to vector<8x32xf32>
    %105 = arith.subf %97, %104 : vector<8x32xf32>
    %106 = arith.mulf %105, %105 : vector<8x32xf32>
    %cst_48 = arith.constant dense<0.000000e+00> : vector<8xf32>
    %107 = vector.multi_reduction <add>, %106, %cst_48 [1] : vector<8x32xf32> to vector<8xf32>
    %108 = vector.shape_cast %107 : vector<8xf32> to vector<8x1xf32>
    %cst_49 = arith.constant 3.200000e+01 : f32
    %109 = vector.broadcast %cst_49 : f32 to vector<8x1xf32>
    %110 = arith.divf %108, %109 : vector<8x1xf32>
    %111 = vector.broadcast %103 : vector<8x1xf32> to vector<8x32xf32>
    %112 = arith.subf %97, %111 : vector<8x32xf32>
    %cst_50 = arith.constant 9.99999974E-6 : f32
    %113 = vector.broadcast %cst_50 : f32 to vector<8x1xf32>
    %114 = arith.addf %110, %113 : vector<8x1xf32>
    %115 = math.rsqrt %114 : vector<8x1xf32>
    %116 = vector.broadcast %115 : vector<8x1xf32> to vector<8x32xf32>
    %117 = arith.mulf %112, %116 : vector<8x32xf32>
    %118 = vector.broadcast %98 : vector<1x32xf32> to vector<8x32xf32>
    %119 = arith.mulf %117, %118 : vector<8x32xf32>
    %120 = vector.broadcast %99 : vector<1x32xf32> to vector<8x32xf32>
    %121 = arith.addf %119, %120 : vector<8x32xf32>
    %122 = arith.truncf %121 : vector<8x32xf32> to vector<8x32xbf16>
    %c0_51 = arith.constant 0 : index
    %c0_52 = arith.constant 0 : index
    %c0_53 = arith.constant 0 : index
    %123 = vector.load %arg14[%c0_51, %c0_52, %c0_53] : memref<1x8x32xbf16, #tpu.memory_space<vmem>>, vector<1x8x32xbf16>
    %124 = vector.shape_cast %123 : vector<1x8x32xbf16> to vector<8x32xbf16>
    %125 = vector.shape_cast %122 : vector<8x32xbf16> to vector<1x8x32xbf16>
    tpu.vector_store %arg14[%c0_51, %c0_52, %c0_53], %125 {strides = array<i32>} : memref<1x8x32xbf16, #tpu.memory_space<vmem>>, vector<1x8x32xbf16>,
    return
  }
  func.func @transform_0(%arg0: i32) -> (i32, i32, i32) {
    %c0_i32 = arith.constant 0 : i32
    %c0_i32_0 = arith.constant 0 : i32
    %c0_i32_1 = arith.constant 0 : i32
    return %arg0, %c0_i32, %c0_i32_0 : i32, i32, i32
  }
  func.func @transform_1(%arg0: i32) -> (i32, i32) {
    %c0_i32 = arith.constant 0 : i32
    %c0_i32_0 = arith.constant 0 : i32
    %c0_i32_1 = arith.constant 0 : i32
    return %c0_i32, %c0_i32_0 : i32, i32
  }
  func.func @transform_2(%arg0: i32) -> (i32, i32) {
    %c0_i32 = arith.constant 0 : i32
    %c0_i32_0 = arith.constant 0 : i32
    %c0_i32_1 = arith.constant 0 : i32
    return %c0_i32, %c0_i32_0 : i32, i32
  }
  func.func @transform_3(%arg0: i32) -> (i32, i32) {
    %c0_i32 = arith.constant 0 : i32
    %c0_i32_0 = arith.constant 0 : i32
    %c0_i32_1 = arith.constant 0 : i32
    return %c0_i32, %c0_i32_0 : i32, i32
  }
  func.func @transform_4(%arg0: i32) -> (i32, i32) {
    %c0_i32 = arith.constant 0 : i32
    %c0_i32_0 = arith.constant 0 : i32
    %c0_i32_1 = arith.constant 0 : i32
    return %c0_i32, %c0_i32_0 : i32, i32
  }
  func.func @transform_5(%arg0: i32) -> (i32, i32) {
    %c0_i32 = arith.constant 0 : i32
    %c0_i32_0 = arith.constant 0 : i32
    %c0_i32_1 = arith.constant 0 : i32
    return %c0_i32, %c0_i32_0 : i32, i32
  }
  func.func @transform_6(%arg0: i32) -> (i32, i32) {
    %c0_i32 = arith.constant 0 : i32
    %c0_i32_0 = arith.constant 0 : i32
    %c0_i32_1 = arith.constant 0 : i32
    return %c0_i32, %c0_i32_0 : i32, i32
  }
  func.func @transform_7(%arg0: i32) -> (i32, i32) {
    %c0_i32 = arith.constant 0 : i32
    %c0_i32_0 = arith.constant 0 : i32
    %c0_i32_1 = arith.constant 0 : i32
    return %c0_i32, %c0_i32_0 : i32, i32
  }
  func.func @transform_8(%arg0: i32) -> (i32, i32) {
    %c0_i32 = arith.constant 0 : i32
    %c0_i32_0 = arith.constant 0 : i32
    %c0_i32_1 = arith.constant 0 : i32
    return %c0_i32, %c0_i32_0 : i32, i32
  }
  func.func @transform_9(%arg0: i32) -> (i32, i32) {
    %c0_i32 = arith.constant 0 : i32
    %c0_i32_0 = arith.constant 0 : i32
    %c0_i32_1 = arith.constant 0 : i32
    return %c0_i32, %c0_i32_0 : i32, i32
  }
  func.func @transform_10(%arg0: i32) -> (i32, i32) {
    %c0_i32 = arith.constant 0 : i32
    %c0_i32_0 = arith.constant 0 : i32
    %c0_i32_1 = arith.constant 0 : i32
    return %c0_i32, %c0_i32_0 : i32, i32
  }
  func.func @transform_11(%arg0: i32) -> (i32, i32) {
    %c0_i32 = arith.constant 0 : i32
    %c0_i32_0 = arith.constant 0 : i32
    %c0_i32_1 = arith.constant 0 : i32
    return %c0_i32, %c0_i32_0 : i32, i32
  }
  func.func @transform_12(%arg0: i32) -> (i32, i32) {
    %c0_i32 = arith.constant 0 : i32
    %c0_i32_0 = arith.constant 0 : i32
    %c0_i32_1 = arith.constant 0 : i32
    return %c0_i32, %c0_i32_0 : i32, i32
  }
  func.func @transform_13(%arg0: i32) -> (i32, i32, i32) {
    %c0_i32 = arith.constant 0 : i32
    %c0_i32_0 = arith.constant 0 : i32
    %c0_i32_1 = arith.constant 0 : i32
    return %arg0, %c0_i32, %c0_i32_0 : i32, i32, i32
  }
  func.func @transform_14(%arg0: i32) -> (i32, i32, i32) {
    %c0_i32 = arith.constant 0 : i32
    %c0_i32_0 = arith.constant 0 : i32
    %c0_i32_1 = arith.constant 0 : i32
    return %arg0, %c0_i32, %c0_i32_0 : i32, i32, i32
  }
}

</mosaic_0001>

<bundles_post_ra>
// kernel: tpu_custom_call.1
= control target key start
LH: loop header
LB: loop body
LE: loop exit
PB: predicated region body
PF: predicated region fallthrough
CT: control target
= control target key end

     0   :  { %20 = vsyncpa [#allocation3], 0  ;;  %s1835_s0 = inlined_call_operand.vmem [shape: f32[2,8,32], index: 0, kind: input, shape index: {}]   ;;  %s1836_s1 = inlined_call_operand.vmem [shape: bf16[32,96], index: 1, kind: input, shape index: {}]   ;;  %s1837_s2 = inlined_call_operand.vmem [shape: f32[1,96], index: 2, kind: input, shape index: {}]   ;;  %s1838_s3 = inlined_call_operand.vmem [shape: bf16[32,32], index: 3, kind: input, shape index: {}]   ;;  %s1839_s4 = inlined_call_operand.vmem [shape: f32[1,32], index: 4, kind: input, shape index: {}]   ;;  %s1840_s5 = inlined_call_operand.vmem [shape: f32[1,32], index: 5, kind: input, shape index: {}]   ;;  %s1841_s6 = inlined_call_operand.vmem [shape: f32[1,32], index: 6, kind: input, shape index: {}]   ;;  %s1842_s7 = inlined_call_operand.vmem [shape: bf16[32,128], index: 7, kind: input, shape index: {}]   ;;  %s1843_s8 = inlined_call_operand.vmem [shape: f32[1,128], index: 8, kind: input, shape index: {}]   ;;  %s1844_s9 = inlined_call_operand.vmem [shape: bf16[128,32], index: 9, kind: input, shape index: {}]   ;;  %s1845_s10 = inlined_call_operand.vmem [shape: f32[1,32], index: 10, kind: input, shape index: {}]   ;;  %s1846_s11 = inlined_call_operand.vmem [shape: f32[1,32], index: 11, kind: input, shape index: {}]   ;;  %s1847_s12 = inlined_call_operand.vmem [shape: f32[1,32], index: 12, kind: input, shape index: {}]   ;;  %s1848_s13 = inlined_call_operand.hbm [shape: bf16[2,8,32], index: 13, kind: output, shape index: {0}]   ;;  %s1849_s14 = inlined_call_operand.vmem [shape: f32[2,8,1], index: 14, kind: output, shape index: {1}]  }
   0x1   :  { %22 = vsyncpa [#allocation3 + $0x1], 0  ;;  %s1578_s29 = smov 0   ;;  %s1580_s30 = smov 0  }
   0x2   :  { %s1582_s15 = smov 0   ;;  %s1584_s16 = smov 0  }
   0x3 LB: > { %1855 = sst [smem:[#allocation5_spill]] %s1488_s15  ;;  %s1599_s17 = sadd.s32 4294967295, %s1492_s16   ;;  %s1492_s16 = sphi %s1584_s16, %s1863_s16   ;;  %s1488_s15 = sphi %s1582_s15, %s1865_s15   ;;  %s1484_s30 = sphi %s1580_s30, %s1867_s30   ;;  %s1480_s29 = sphi %s1578_s29, %s1866_s29  }
   0x4   : > { %s1217_s18 = sadd.s32 4294967294, %s1492_s16   ;;  %s1603_s19 = sadd.s32 1, %s1492_s16  }
   0x5   : > { %1856 = sst [smem:[#allocation6_spill]] %s1603_s19  ;;  %s313_s20 = sadd.s32 1, %s1488_s15 }
   0x6   : > { %s310_s21 = ssub.s32 %s1492_s16, %s1603_s19  ;;  %p323_p0 = scmp.ne.s32.totalorder %s1488_s15, %s1484_s30 }
   0x7   : > { %p311_p1 = scmp.eq.s32.totalorder %s310_s21, 0  ;;  %p324_p2 = scmp.eq.s32.totalorder %s1599_s17, 1 }
   0x8   : > { %p329_p3 = scmp.ne.s32.totalorder %s1484_s30, %s1480_s29  ;;  %p330_p4 = scmp.eq.s32.totalorder %s1217_s18, 1 }
   0x9   : > { %s1614_s22 = scalar_select %p311_p1, %s1488_s15, %s313_s20  }
   0xa   : > { %p1616_p5 = por %p324_p2, %p323_p0  ;;  %p1620_p6 = por %p330_p4, %p329_p3 }
   0xb   : > { %1857 = sst [smem:[#allocation7_spill]] %s1614_s22  ;;  %p1220_p7 = scmp.ge.s32.totalorder %s1492_s16, 1 }
   0xc   : > { %s1859_s24 = scalar_select %p1620_p6, 1, 0 }
   0xd   : > { %p417_p8 = scmp.lt.s32.totalorder %s1492_s16, 3 }
   0xe   : > { %1860 = sst [smem:[#allocation8_spill]] %s1859_s24 }
   0xf   : > { %p418_p9 = pnand %p1220_p7, %p417_p8 }
  0x10   : > { %s1850_s25 = sand.u32 (!%p418_p9), 1, %s1484_s30   ;;  %v1494_v0 = vmov (!%p418_p9), 0.0   ;;  %v1400_v1 = vld [vmem:[%s1836_s1] sm:$0xff] (!%p418_p9)   ;;  %p466_p10 = scmp.lt.s32.totalorder (!%p418_p9), %s1599_s17, 1  ;;  %v1401_v2 = vld [vmem:[%s1836_s1 + $0x8] sm:$0xff] (!%p418_p9)   ;;  %vm1495_vm0 = vmmov (!%p418_p9), 0  }
  0x11   : > { %421 = sbr.rel (%p418_p9) target bundleno = 3588 (0xe04), region = 72  ;;  %s1629_s26 = sshll.u32 (!%p418_p9), %s1850_s25, 2  ;;  %1285 = vmatprep.subr.bf16.mxu0 (!%p418_p9), %v1494_v0  ;;  %1289 = vmatprep.mubr.msk.bf16.mxu0 (!%p418_p9), %vm1495_vm0, %v1494_v0  ;;  %vm501_vm1 = vcmask (!%p418_p9), 261120   ;;  %v1224_v5 = vld [vmem:[%s1837_s2] ss:$0 sm:$0xff] (!%p418_p9)  ;;  %vm551_vm2 = vcmask (!%p418_p9), 130048  }
  0x12   : > { %1286 = vmatpush3.bf16.msra.mxu0 (!%p418_p9), %v1400_v1  ;;  %s1496_s19 = smov (!%p418_p9), 96   ;;  %vm598_vm3 = vcmask (!%p418_p9), 64512   ;;  %p1229_p11 = scmp.ne.s32.totalorder (!%p418_p9), %s1599_s17, 0 }
  0x13   : > { %1287 = vmatprep.subr.bf16.mxu0 (!%p418_p9), %v1494_v0 }
  0x16   : > { %1288 = vmatpush3.bf16.msra.mxu0 (!%p418_p9), %v1401_v2 }
  0x17   : > { %1293 = vmatprep.subr.bf16.mxu0 (!%p418_p9), %v1494_v0 }
  0x18   : > { %s467_s21 = scalar_select %p466_p10, %s1599_s17, 1 }
  0x19   : > { %vm620_vm4 = vcmask (!%p1229_p11), 7168  }
  0x1a   : > { %s1222_s25 = sshll.u32 %s467_s21, 3 }
  0x1b   : > { %s469_s27 = scalar_lea.vmem %s1835_s0, %s1222_s25  ;;  %s1649_s24 = scalar_lea.vmem %s1849_s14, %s1222_s25 }
  0x1c   : > { %v1651_v3 = vld [vmem:[%s469_s27] sm:$0xff]  ;;  %s459_s25 = scalar_lea.vmem [#allocation2], %s1629_s26 }
  0x1d   : > { %v477_v4 = vpack.c.bf16 %v1651_v3, %v1651_v3 }
  0x1f   : > { %1290 = vmatmul.mubr.msk.bf16.vlgmr.msra.gmra.mrb[0].mxu0 %vm501_vm1, %v477_v4 }
  0x20   : > { %1295 = vmatprep.mubr.msk.bf16.mxu0 %vm1495_vm0, %v1494_v0 }
  0xf2   : > { %v539_v6 = vpop.f32.mrb[0].mxu0 }
  0xf3   : > { %v540_v7 = vadd.f32 %v1224_v5, %v539_v6  ;;  %v1291_v8 = vpop.f32.mrb[1].mxu0 }
  0xf4   : > { %v542_v9 = vpop.f32.mrb[2].mxu0 }
  0xf5   : > { %v1292_v10 = vpop.f32.mrb[3].mxu0  ;;  %v1662_v11 = vpack.c.bf16 %v540_v7, %v540_v7  ;;  %v545_v14 = vmul.f32 0.25, %v540_v7 }
  0xf7   : > { %549 = vrot.lane.b32.xlu0 %v1662_v11, %s1496_s19  ;;  %v546_v15 = vpack.c.bf16 %v545_v14, %v545_v14 }
 0x169   : > { %v550_v12 = vpop.permute.xlu0 %549 }
 0x16a   : > { %v556_v13 = vsel %vm551_vm2, %v550_v12, 0 }
 0x16b   : > { %1294 = vmatpush3.bf16.xpose.msra.mxu0 %v556_v13 }
 0x172   : > { %1296 = vmatmul.mubr.msk.bf16.vlgmr.msra.gmra.mrb[4].mxu0 %vm551_vm2, %v546_v15 }
 0x245   : > { %v592_v16 = vpop.f32.mrb[4].mxu0 }
 0x246   : > { %v1297_v17 = vpop.f32.mrb[5].mxu0  ;;  %v599_v18 = vsel %vm598_vm3, %v592_v16, -inf }
 0x247   : > { %600 = vmax.xlane.f32.xlu0 %v599_v18  ;;  %v595_v19 = vpop.f32.mrb[6].mxu0 }
 0x248   : > { %v1298_v20 = vpop.f32.mrb[7].mxu0 }
 0x2d4   : > { %v601_v21 = vpop.xlane.xlu0 %600 }
 0x2d5   : > { %v602_v22 = vsub.f32 %v592_v16, %v601_v21 }
 0x2d7   : > { %v603_v23 = vmul.f32 1.442695, %v602_v22 }
 0x2d9   : > { %1402 = vpow2.f32 %v603_v23 }
 0x2e3   : > { %v1403_v24 = vpop.eup %1402 }
 0x2e4   : > { %v605_v25 = vsel %vm598_vm3, %v1403_v24, 0.0 }
 0x2e5   : > { %606 = vadd.xlane.f32.xlu1 %v605_v25 }
 0x372   : > { %v607_v26 = vpop.xlane.xlu1 %606 }
 0x373   : > { %1404 = vrcp.f32 %v607_v26 }
 0x374   : > { %1406 = vlog2.f32 (!%p1229_p11), %v607_v26 }
 0x378   : > { %612 = sbr.rel (%p1229_p11) target bundleno = 1044 (0x414), region = 76 }
 0x37d   : > { %v1405_v27 = vpop.eup %1404 }
 0x37e   : > { %v609_v28 = vmul.f32 %v1405_v27, %v1403_v24  ;;  %v1407_v31 = vpop.eup (!%p1229_p11), %1406 }
 0x37f   : > { %v614_v32 = vmul.f32 0.6931472, %v1407_v31 }
 0x380   : > { %v615_v29 = vmul.f32 %v609_v28, %v602_v22 }
 0x382   : > { %v616_v30 = vsel %vm598_vm3, %v615_v29, 0.0 }
 0x383   : > { %617 = vadd.xlane.f32.xlu0 %v616_v30 }
 0x410   : > { %v618_v33 = vpop.xlane.xlu0 %617 }
 0x411   : > { %v619_v34 = vsub.f32 %v614_v32, %v618_v33 }
 0x413   : > { %621 = vst.msk [vmem:[%s1649_s24] sm:$0xff] %vm620_vm4, %v619_v34 }
 0x414 PF: > { %1305 = vmatprep.subr.bf16.mxu1 %v1494_v0  ;;  %1307 = vmatprep.mubr.msk.bf16.mxu1 %vm1495_vm0, %v1494_v0  ;;  %s1497_s18 = smov 80   ;;  %s1498_s20 = smov 64   ;;  %vm628_vm5 = vcmask 1043456   ;;  %v622_v40 = vpack.c.bf16 %v609_v28, %v609_v28  ;;  %vm746_vm6 = vcmask (!%p1229_p11), 7168  }
 0x415   : > { %675 = vrot.lane.b32.xlu0 %v1662_v11, %s1497_s18  ;;  %1299 = vmatprep.subr.bf16.mxu0 %v1494_v0  ;;  %s1499_s21 = smov 112  }
 0x416   : > { %623 = vrot.lane.b32.xlu1 %v1662_v11, %s1498_s20  ;;  %1301 = vmatprep.mubr.msk.bf16.mxu0 %vm1495_vm0, %v1494_v0 }
 0x419   : > { %673 = vrot.lane.b32.xlu0 %v546_v15, %s1499_s21 }
 0x41a   : > { %v744_v63 = vld [vmem:[%s1649_s24] sm:$0xff] (!%p1229_p11) }
 0x487   : > { %v676_v35 = vpop.permute.xlu0 %675 }
 0x488   : > { %v681_v36 = vsel %vm551_vm2, %v676_v35, 0  ;;  %v624_v38 = vpop.permute.xlu1 %623 }
 0x489   : > { %1306 = vmatpush3.bf16.xpose.msra.mxu1 %v681_v36  ;;  %v630_v39 = vsel %vm628_vm5, %v624_v38, 0 }
 0x48a   : > { %1300 = vmatpush3.bf16.msra.mxu0 %v630_v39 }
 0x48b   : > { %v674_v37 = vpop.permute.xlu0 %673 }
 0x48d   : > { %1302 = vmatmul.mubr.msk.bf16.vlgmr.msra.gmra.mrb[8].mxu0 %vm598_vm3, %v622_v40 }
 0x490   : > { %1308 = vmatmul.mubr.msk.bf16.vlgmr.msra.gmra.mrb[0].mxu1 %vm551_vm2, %v674_v37 }
 0x560   : > { %v666_v51 = vpop.f32.mrb[8].mxu0 }
 0x561   : > { %v1303_v52 = vpop.f32.mrb[9].mxu0 }
 0x562   : > { %v669_v53 = vpop.f32.mrb[10].mxu0 }
 0x563   : > { %v717_v41 = vpop.f32.mrb[0].mxu1  ;;  %v1304_v54 = vpop.f32.mrb[11].mxu0 }
 0x564   : > { %v1309_v42 = vpop.f32.mrb[1].mxu1  ;;  %v723_v43 = vsel %vm598_vm3, %v717_v41, -inf }
 0x565   : > { %v720_v44 = vpop.f32.mrb[2].mxu1  ;;  %724 = vmax.xlane.f32.xlu1 %v723_v43 }
 0x566   : > { %v1310_v45 = vpop.f32.mrb[3].mxu1 }
 0x5f2   : > { %v725_v46 = vpop.xlane.xlu1 %724 }
 0x5f3   : > { %v726_v47 = vsub.f32 %v717_v41, %v725_v46 }
 0x5f5   : > { %v727_v48 = vmul.f32 1.442695, %v726_v47 }
 0x5f7   : > { %1408 = vpow2.f32 %v727_v48 }
 0x601   : > { %v1409_v49 = vpop.eup %1408 }
 0x602   : > { %v729_v50 = vsel %vm598_vm3, %v1409_v49, 0.0 }
 0x603   : > { %730 = vadd.xlane.f32.xlu0 %v729_v50 }
 0x690   : > { %v731_v55 = vpop.xlane.xlu0 %730 }
 0x691   : > { %1410 = vrcp.f32 %v731_v55 }
 0x692   : > { %1412 = vlog2.f32 (!%p1229_p11), %v731_v55 }
 0x696   : > { %736 = sbr.rel (%p1229_p11) target bundleno = 1844 (0x734), region = 80 }
 0x69b   : > { %v1411_v56 = vpop.eup %1410 }
 0x69c   : > { %v733_v57 = vmul.f32 %v1411_v56, %v1409_v49  ;;  %v1413_v60 = vpop.eup (!%p1229_p11), %1412 }
 0x69d   : > { %v738_v61 = vmul.f32 0.6931472, %v1413_v60 }
 0x69e   : > { %v739_v58 = vmul.f32 %v733_v57, %v726_v47 }
 0x6a0   : > { %v740_v59 = vsel %vm598_vm3, %v739_v58, 0.0 }
 0x6a1   : > { %741 = vadd.xlane.f32.xlu0 %v740_v59 }
 0x72e   : > { %v742_v62 = vpop.xlane.xlu0 %741 }
 0x72f   : > { %v743_v1 = vsub.f32 %v738_v61, %v742_v62 }
 0x731   : > { %v745_v2 = vmax.f32 %v744_v63, %v743_v1 }
 0x733   : > { %747 = vst.msk [vmem:[%s1649_s24] sm:$0xff] %vm746_vm6, %v745_v2 }
 0x734 PF: > { %1311 = vmatprep.subr.bf16.mxu0 %v1494_v0  ;;  %1313 = vmatprep.mubr.msk.bf16.mxu0 %vm1495_vm0, %v1494_v0  ;;  %s1500_s27 = smov 48   ;;  %v748_v6 = vpack.c.bf16 %v733_v57, %v733_v57  ;;  %v1414_v7 = vld [vmem:[%s1838_s3] sm:$0xff]   ;;  %v1415_v8 = vld [vmem:[%s1838_s3 + $0x8] sm:$0xff]   ;;  %s1501_s19 = smov 16   ;;  %v1420_v32 = vld [vmem:[%s1844_s9 + $0x10] sm:$0xff]   ;;  %vm1111_vm7 = vcmask 257024  }
 0x735   : > { %749 = vrot.lane.b32.xlu0 %v1662_v11, %s1500_s27  ;;  %1317 = vmatprep.subr.bf16.mxu1 %v1494_v0  ;;  %v1234_v16 = vld [vmem:[%s1839_s4] ss:$0 sm:$0xff]  ;;  %v1419_v31 = vld [vmem:[%s1844_s9 + $0x8] sm:$0xff]   ;;  %v1421_v33 = vld [vmem:[%s1844_s9 + $0x18] sm:$0xff]   ;;  %s1256_s22 = sshll.u32 %s1599_s17, 6  ;;  %s1861_s27 = sand.u32 1, %s1484_s30  }
 0x736   : > { %1321 = vmatprep.mubr.msk.bf16.mxu1 %vm1495_vm0, %v1494_v0  ;;  %1318 = vmatpush3.bf16.msra.mxu1 %v1414_v7  ;;  %v1416_v29 = vld [vmem:[%s1842_s7] sm:$0xff]   ;;  %v1423_v35 = vld [vmem:[%s1844_s9 + $0x28] sm:$0xff]   ;;  %v1424_v46 = vld [vmem:[%s1844_s9 + $0x30] sm:$0xff]   ;;  %s1789_s21 = scalar_lea.hbm %s1848_s13, %s1256_s22  ;;  %s1114_s24 = scalar_lea.sflag [#allocation3], %s1861_s27 }
 0x737   : > { %1319 = vmatprep.subr.bf16.mxu1 %v1494_v0  ;;  %v1418_v30 = vld [vmem:[%s1844_s9] sm:$0xff]   ;;  %v1425_v47 = vld [vmem:[%s1844_s9 + $0x38] sm:$0xff]   ;;  %s1502_s28 = smov [#allocation2]  }
 0x738   : > { %v1422_v34 = vld [vmem:[%s1844_s9 + $0x20] sm:$0xff]   ;;  %s1434_s15 = sshll.u32 %s1502_s28, 4  ;;  %s1435_s15 = int_to_ptr.vmem [resolvable:$false] %s1434_s15 }
 0x739   : > { %v1238_v40 = vld [vmem:[%s1840_s5] ss:$0 sm:$0xff]  ;;  %s1436_s18 = scalar_lea.vmem %s1435_s15, 128 }
 0x73a   : > { %1320 = vmatpush3.bf16.msra.mxu1 %v1415_v8  ;;  %v1239_v42 = vld [vmem:[%s1841_s6] ss:$0 sm:$0xff] }
 0x73b   : > { %1333 = vmatprep.subr.bf16.mxu1 %v1494_v0  ;;  %v1240_v48 = vld [vmem:[%s1843_s8] ss:$0 sm:$0xff] }
 0x7a7   : > { %v750_v4 = vpop.permute.xlu0 %749 }
 0x7a8   : > { %v755_v5 = vsel %vm628_vm5, %v750_v4, 0 }
 0x7a9   : > { %1312 = vmatpush3.bf16.msra.mxu0 %v755_v5 }
 0x7aa   : > { %1325 = vmatprep.subr.bf16.mxu0 %v1494_v0 }
 0x7ac   : > { %1314 = vmatmul.mubr.msk.bf16.vlgmr.msra.gmra.mrb[12].mxu0 %vm598_vm3, %v748_v6 }
 0x7ad   : > { %1329 = vmatprep.mubr.msk.bf16.mxu0 %vm1495_vm0, %v1494_v0  ;;  %1326 = vmatpush3.bf16.msra.mxu0 %v1416_v29 }
 0x7ae   : > { %1327 = vmatprep.subr.bf16.mxu0 %v1494_v0 }
 0x87f   : > { %v791_v9 = vpop.f32.mrb[12].mxu0 }
 0x880   : > { %798 = vrot.lane.b32.xlu0 %v791_v9, %s1501_s19  ;;  %v1315_v10 = vpop.f32.mrb[13].mxu0  ;;  %s1131_s19 = sshll.u32 %s459_s25, 4  ;;  %s1791_s19 = int_to_ptr.vmem [resolvable:$true] %s1131_s19 }
 0x881   : > { %v794_v11 = vpop.f32.mrb[14].mxu0  ;;  %v1253_v10 = vld [vmem:[%s1846_s11] ss:$0 sm:$0xff]  ;;  %s1430_s17 = scalar_lea.vmem %s1791_s19, 64  ;;  %p1437_p1 = scmp.lt.s32.totalorder %s1791_s19, %s1435_s15 }
 0x882   : > { %v1316_v12 = vpop.f32.mrb[15].mxu0  ;;  %p1431_p12 = scmp.ne.s32.totalorder %s1791_s19, %s1430_s17  ;;  %p1438_p2 = scmp.lt.s32.totalorder %s1436_s18, %s1430_s17 }
 0x883   : > { %v1254_v12 = vld [vmem:[%s1847_s12] ss:$0 sm:$0xff] }
 0x884   : > { %p1432_p13 = pnand %p1431_p12, %p1616_p5  ;;  %p1439_p3 = por %p1438_p2, %p1437_p1 }
 0x886   : > { %p1433_p0 = pneg %p1432_p13 }
 0x888   : > { %p1440_p4 = pnand %p1439_p3, %p1433_p0 }
 0x8f2   : > { %v799_v13 = vpop.permute.xlu0 %798 }
 0x8f3   : > { %v801_v14 = vsel %vm551_vm2, %v666_v51, %v799_v13 }
 0x8f4   : > { %v802_v15 = vpack.c.bf16 %v801_v14, %v801_v14 }
 0x8f6   : > { %1322 = vmatmul.mubr.msk.bf16.vlgmr.msra.gmra.mrb[4].mxu1 %vm501_vm1, %v802_v15 }
 0x8f7   : > { %1349 = vmatprep.mubr.msk.bf16.mxu1 %vm1495_vm0, %v1494_v0  ;;  %1334 = vmatpush3.bf16.msra.mxu1 %v1418_v30 }
 0x8f8   : > { %1335 = vmatprep.subr.bf16.mxu1 %v1494_v0 }
 0x8fb   : > { %1336 = vmatpush3.bf16.msra.mxu1 %v1419_v31 }
 0x8fc   : > { %1337 = vmatprep.subr.bf16.mxu1 %v1494_v0 }
 0x8ff   : > { %1338 = vmatpush3.bf16.msra.mxu1 %v1420_v32 }
 0x900   : > { %1339 = vmatprep.subr.bf16.mxu1 %v1494_v0 }
 0x903   : > { %1340 = vmatpush3.bf16.msra.mxu1 %v1421_v33 }
 0x904   : > { %1341 = vmatprep.subr.bf16.mxu1 %v1494_v0 }
 0x907   : > { %1342 = vmatpush3.bf16.msra.mxu1 %v1422_v34 }
 0x908   : > { %1343 = vmatprep.subr.bf16.mxu1 %v1494_v0 }
 0x90b   : > { %1344 = vmatpush3.bf16.msra.mxu1 %v1423_v35 }
 0x90c   : > { %1345 = vmatprep.subr.bf16.mxu1 %v1494_v0 }
 0x90f   : > { %1346 = vmatpush3.bf16.msra.mxu1 %v1424_v46 }
 0x910   : > { %1347 = vmatprep.subr.bf16.mxu1 %v1494_v0  ;;  %v1244_v0 = vld [vmem:[%s1845_s10] ss:$0 sm:$0xff] }
 0x913   : > { %1348 = vmatpush3.bf16.msra.mxu1 %v1425_v47 }
 0x9c9   : > { %v863_v17 = vpop.f32.mrb[4].mxu1 }
 0x9ca   : > { %v864_v18 = vadd.f32 %v1234_v16, %v863_v17  ;;  %v1323_v19 = vpop.f32.mrb[5].mxu1 }
 0x9cb   : > { %v866_v20 = vpop.f32.mrb[6].mxu1 }
 0x9cc   : > { %v869_v21 = vadd.f32 %v864_v18, %v1651_v3  ;;  %v1324_v22 = vpop.f32.mrb[7].mxu1  ;;  %v1417_v3 = vld [vmem:[%s1842_s7 + $0x8] sm:$0xff]  }
 0x9cd   : > { %1328 = vmatpush3.bf16.msra.mxu0 %v1417_v3 }
 0x9ce   : > { %v872_v23 = vsel %vm501_vm1, %v869_v21, 0.0 }
 0x9cf   : > { %873 = vadd.xlane.f32.xlu1 %v872_v23 }
 0xa5c   : > { %v874_v24 = vpop.xlane.xlu1 %873 }
 0xa5d   : > { %v876_v25 = vmul.f32 0.03125, %v874_v24 }
 0xa5f   : > { %v877_v26 = vsub.f32 %v869_v21, %v876_v25 }
 0xa61   : > { %v878_v27 = vmul.f32 %v877_v26, %v877_v26 }
 0xa63   : > { %v879_v28 = vsel %vm501_vm1, %v878_v27, 0.0 }
 0xa64   : > { %880 = vadd.xlane.f32.xlu1 %v879_v28 }
 0xaf1   : > { %v881_v36 = vpop.xlane.xlu1 %880 }
 0xaf2   : > { %v882_v37 = vmul.f32 0.03125, %v881_v36 }
 0xaf4   : > { %v883_v38 = vadd.f32 1e-05, %v882_v37 }
 0xaf6   : > { %1426 = vrsqrt.f32 %v883_v38 }
 0xb00   : > { %v1427_v39 = vpop.eup %1426 }
 0xb01   : > { %v885_v41 = vmul.f32 %v1427_v39, %v877_v26 }
 0xb03   : > { %v892_v43 = vmul.f32 %v1238_v40, %v885_v41 }
 0xb05   : > { %v899_v44 = vadd.f32 %v1239_v42, %v892_v43 }
 0xb07   : > { %v900_v45 = vpack.c.bf16 %v899_v44, %v899_v44 }
 0xb09   : > { %1330 = vmatmul.mubr.msk.bf16.vlgmr.msra.gmra.mrb[16].mxu0 %vm501_vm1, %v900_v45 }
 0xbdc   : > { %v961_v49 = vpop.f32.mrb[16].mxu0 }
 0xbdd   : > { %v962_v50 = vadd.f32 %v1240_v48, %v961_v49  ;;  %v1331_v51 = vpop.f32.mrb[17].mxu0 }
 0xbde   : > { %v964_v52 = vpop.f32.mrb[18].mxu0 }
 0xbdf   : > { %v967_v53 = vmax.f32 %v962_v50, 0.0  ;;  %v1332_v54 = vpop.f32.mrb[19].mxu0 }
 0xbe1   : > { %v968_v55 = vpack.c.bf16 %v967_v53, %v967_v53 }
 0xbe3   : > { %1350 = vmatmul.mubr.bf16.vlgmr.msra.gmra.mrb[8].mxu1 %v968_v55 }
 0xcb6   : > { %v1074_v56 = vpop.f32.mrb[8].mxu1 }
 0xcb7   : > { %v1075_v57 = vadd.f32 %v1244_v0, %v1074_v56  ;;  %v1351_v58 = vpop.f32.mrb[9].mxu1 }
 0xcb8   : > { %v1077_v59 = vpop.f32.mrb[10].mxu1 }
 0xcb9   : > { %v1352_v60 = vpop.f32.mrb[11].mxu1  ;;  %v1080_v61 = vadd.f32 %v1075_v57, %v899_v44 }
 0xcbb   : > { %v1083_v62 = vsel %vm501_vm1, %v1080_v61, 0.0 }
 0xcbc   : > { %1084 = vadd.xlane.f32.xlu0 %v1083_v62 }
 0xd49   : > { %v1085_v63 = vpop.xlane.xlu0 %1084 }
 0xd4a   : > { %v1086_v1 = vmul.f32 0.03125, %v1085_v63 }
 0xd4c   : > { %v1087_v2 = vsub.f32 %v1080_v61, %v1086_v1 }
 0xd4e   : > { %v1088_v4 = vmul.f32 %v1087_v2, %v1087_v2 }
 0xd50   : > { %v1089_v5 = vsel %vm501_vm1, %v1088_v4, 0.0 }
 0xd51   : > { %1090 = vadd.xlane.f32.xlu1 %v1089_v5 }
 0xdde   : > { %v1091_v6 = vpop.xlane.xlu1 %1090 }
 0xddf   : > { %v1092_v7 = vmul.f32 0.03125, %v1091_v6 }
 0xde1   : > { %v1093_v8 = vadd.f32 1e-05, %v1092_v7 }
 0xde3   : > { %1428 = vrsqrt.f32 %v1093_v8 }
 0xded   : > { %v1429_v9 = vpop.eup %1428 }
 0xdee   : > { %v1095_v11 = vmul.f32 %v1429_v9, %v1087_v2 }
 0xdf0   : > { %v1102_v13 = vmul.f32 %v1253_v10, %v1095_v11 }
 0xdf2   : > { %v1109_v14 = vadd.f32 %v1254_v12, %v1102_v13 }
 0xdf4   : > { %v1110_v15 = vpack.c.bf16 %v1109_v14, %v1109_v14 }
 0xdf6   : > { %1112 = vst.msk [vmem:[%s459_s25] sm:$0xf] %vm1111_vm7, %v1110_v15 }
 0xdf7   : > { %1443 = shalt.err (!%p1440_p4)
}
 0xdf8   : > { %s1444_s26 = scalar_lea.hbm %s1789_s21, 64  ;;  %s1448_s20 = scalar_lea.hbm %s1848_s13, 128 }
 0xdf9   : > { %p1445_p7 = scmp.ne.s32.totalorder %s1789_s21, %s1444_s26  ;;  %p1449_p10 = scmp.lt.u32.totalorder %s1789_s21, %s1848_s13 }
 0xdfa   : > { %p1450_p11 = scmp.lt.u32.totalorder %s1448_s20, %s1444_s26  ;;  %p1452_p13 = scmp.lt.u32.totalorder %s1444_s26, %s1789_s21 }
 0xdfb   : > { %p1446_p8 = pnand %p1445_p7, %p1616_p5 }
 0xdfc   : > { %p1451_p12 = por %p1450_p11, %p1449_p10 }
 0xdfd   : > { %p1447_p9 = pneg %p1446_p8 }
 0xdfe   : > { %p1453_p0 = por %p1452_p13, %p1451_p12 }
 0xe00   : > { %p1454_p1 = pnand %p1453_p0, %p1447_p9 }
 0xe02   : > { %1457 = shalt.err (!%p1454_p1)
}
 0xe03   : > { %1353 = dma.vmem_to_hbm [thread:$0]  (%p1616_p5), %s1791_s19, 64, %s1789_s21, %s1114_s24  }
 0xe04 PF: > { %p1359_p2 = scmp.ge.s32.totalorder %s1492_s16, 2  ;;  %s1146_s15 = sand.u32 1, %s1480_s29  }
 0xe05   : > { %s1147_s18 = scalar_lea.sflag [#allocation3], %s1146_s15 }
 0xe06   : > { %p1356_p3 = pnand %p1359_p2, %p1620_p6 }
 0xe08   : > { %1475 = dma.done.wait (!%p1356_p3), %s1147_s18, 64  }
 0xe09   : > { %1477 = vsyncadd (!%p1356_p3), %s1147_s18, 4294967232  ;;  %s1863_s16 = sld [smem:[#allocation6_spill]]  ;;  %s1864_s26 = sld [smem:[#allocation5_spill]] }
 0xe0a   : > { %s1865_s15 = sld [smem:[#allocation7_spill]]  ;;  %s1866_s29 = smov %s1484_s30 }
 0xe0f   : > { %p25_p4 = scmp.ge.s32.totalorder %s1863_s16, 4   ;;  %s1867_s30 = smov %s1864_s26 }
 0xe11   :  { %27 = sbr.rel (!%p25_p4) target bundleno = 3 (0x3), region = 127 }
 0xe18   :  { %1159 = vsyncpa [#allocation3], 1 }
 0xe19   :  { %1161 = vsyncpa [#allocation3 + $0x1], 1 }

</bundles_post_ra>
